<compile_context>
chip_gen: v7x
topology: tpu7x:2x2x1
jax: 0.10.0
libtpu: 0.0.40
codegen_flags: <defaults>
</compile_context>

<pallas_src>
import functools

import jax
import jax.numpy as jnp
import numpy as np
from jax.experimental import pallas as pl
from jax.experimental.pallas import tpu as pltpu


# ------------------------------ Pallas kernel --------------------------------

def _fused_kernel(x_ref, shift_ref, a1w_ref, b1t_ref, a2w_ref, b2t_ref,
                  pr_ref, pc_ref, o_ref, *, H, W, C1, C2):
    """One image per grid step.

    x_ref     : (H, W*Cin)        input image, channels folded onto lanes
    shift_ref : (3, H, H)         y-shift matrices (zero rows handle SAME y-padding)
    a1w_ref   : (3, W*Cin, W*C1)  banded conv1 weights (x-padding folded in)
    b1t_ref   : (1, W*C1)         conv1 bias tiled per lane
    a2w_ref   : (3, W*C1, W*C2)   banded conv2 weights
    b2t_ref   : (1, W*C2)         conv2 bias tiled per lane
    pr_ref    : (OH, H)           2x2-pool row-averaging matrix
    pc_ref    : (W*C2, OW*C2)     2x2-pool column-averaging matrix
    o_ref     : (OH, OW*C2)       pooled output (lane-dense, 128 lanes)
    """
    x = x_ref[...]                                              # (H, W*Cin)

    # ---- conv1 + bias + ReLU (bias folded into accumulator init) ----
    acc1 = jnp.broadcast_to(b1t_ref[...], (H, W * C1))
    for dy in range(3):
        xs = jnp.dot(shift_ref[dy], x, preferred_element_type=jnp.float32)
        acc1 = acc1 + jnp.dot(xs, a1w_ref[dy], preferred_element_type=jnp.float32)
    a1 = jnp.maximum(acc1, 0.0)                                 # (H, W*C1)

    # ---- conv2 + bias + ReLU ----
    acc2 = jnp.broadcast_to(b2t_ref[...], (H, W * C2))
    for dy in range(3):
        a1s = jnp.dot(shift_ref[dy], a1, preferred_element_type=jnp.float32)
        acc2 = acc2 + jnp.dot(a1s, a2w_ref[dy], preferred_element_type=jnp.float32)
    a2 = jnp.maximum(acc2, 0.0)                                 # (H, W*C2)

    # ---- fused 2x2 average pool: Pr @ a2 @ Pc -> (OH, OW*C2) lane-dense ----
    pooled = jnp.dot(jnp.dot(pr_ref[...], a2, preferred_element_type=jnp.float32),
                     pc_ref[...], preferred_element_type=jnp.float32)
    o_ref[...] = pooled


# ------------------------------ Weight plumbing -------------------------------

def _band_weights(w_oihw, W):
    """Expand a (Cout, Cin, 3, 3) conv weight into 3 banded (W*Cin, W*Cout) matrices.

    A[dy][(w+dx-1)*Cin + ci, w*Cout + co] = w[co, ci, dy, dx]  (entries for out-of-range
    w+dx-1 are absent, which realizes SAME zero-padding along x).
    """
    Cout, Cin, KH, KW = w_oihw.shape
    mats = []
    for dy in range(KH):
        a_dy = jnp.zeros((W * Cin, W * Cout), jnp.float32)
        for dx in range(KW):
            shift = jnp.eye(W, k=1 - dx, dtype=jnp.float32)      # [src, w]=1 iff src=w+dx-1
            blk = jnp.transpose(w_oihw[:, :, dy, dx])             # (Cin, Cout)
            a_dy = a_dy + jnp.kron(shift, blk)
        mats.append(a_dy)
    return jnp.stack(mats)                                        # (3, W*Cin, W*Cout)


# --------------------------- FeatureExtractor forward --------------------------

def feature_extractor_forward(x_nchw, params):
    """Sequentially apply the submodule's children, exactly as FeatureExtractor does,
    but fused into a single Pallas call."""
    N, Cin, H, W = x_nchw.shape
    C1 = params["w1"].shape[0]
    C2 = params["w2"].shape[0]
    OH, OW = H // 2, W // 2

    # NCHW -> per-image folded (N, H, W*Cin)  (cheap XLA glue)
    x_fold = jnp.transpose(x_nchw, (0, 2, 3, 1)).reshape(N, H, W * Cin)

    # y-shift matrices: row h picks input row h+dy-1 (zero row at the boundary).
    shift = jnp.stack([jnp.eye(H, k=dy - 1, dtype=jnp.float32) for dy in range(3)])

    a1w = _band_weights(params["w1"], W)                          # (3, W*Cin, W*C1)
    a2w = _band_weights(params["w2"], W)                          # (3, W*C1, W*C2)
    b1t = jnp.tile(params["b1"], W).reshape(1, W * C1)
    b2t = jnp.tile(params["b2"], W).reshape(1, W * C2)

    # 2x2 average-pool as matmuls.
    pr = 0.5 * jnp.repeat(jnp.eye(OH, dtype=jnp.float32), 2, axis=1)        # (OH, H)
    pc = 0.5 * jnp.kron(jnp.repeat(jnp.eye(OW, dtype=jnp.float32), 2, axis=0),
                        jnp.eye(C2, dtype=jnp.float32))                     # (W*C2, OW*C2)

    kernel = functools.partial(_fused_kernel, H=H, W=W, C1=C1, C2=C2)

    out = pl.pallas_call(
        kernel,
        out_shape=jax.ShapeDtypeStruct((N, OH, OW * C2), jnp.float32),
        grid=(N,),
        in_specs=[
            pl.BlockSpec((None, H, W * Cin), lambda n: (n, 0, 0)),
            pl.BlockSpec((3, H, H), lambda n: (0, 0, 0)),
            pl.BlockSpec((3, W * Cin, W * C1), lambda n: (0, 0, 0)),
            pl.BlockSpec((1, W * C1), lambda n: (0, 0)),
            pl.BlockSpec((3, W * C1, W * C2), lambda n: (0, 0, 0)),
            pl.BlockSpec((1, W * C2), lambda n: (0, 0)),
            pl.BlockSpec((OH, H), lambda n: (0, 0)),
            pl.BlockSpec((W * C2, OW * C2), lambda n: (0, 0)),
        ],
        out_specs=pl.BlockSpec((None, OH, OW * C2), lambda n: (n, 0, 0)),
        compiler_params=pltpu.CompilerParams(
            dimension_semantics=("parallel",)),                   # megacore on v7x
    )(x_fold, shift, a1w, b1t, a2w, b2t, pr, pc)

    # (N, OH, OW*C2) -> NCHW
    return jnp.transpose(out.reshape(N, OH, OW, C2), (0, 3, 1, 2))


# ------------------------------ Pure-JAX reference -----------------------------

def reference_forward(x_nchw, params):
    dn = ("NCHW", "OIHW", "NCHW")
    y = jax.lax.conv_general_dilated(x_nchw, params["w1"], (1, 1), "SAME",
                                     dimension_numbers=dn)
    y = jnp.maximum(y + params["b1"][None, :, None, None], 0.0)
    y = jax.lax.conv_general_dilated(y, params["w2"], (1, 1), "SAME",
                                     dimension_numbers=dn)
    y = jnp.maximum(y + params["b2"][None, :, None, None], 0.0)
    N, C, H, W = y.shape
    return y.reshape(N, C, H // 2, 2, W // 2, 2).mean(axis=(3, 5))


# ------------------------------------ main --------------------------------------

if __name__ == "__main__":
    key = jax.random.PRNGKey(0)
    k_x, k_w1, k_b1, k_w2, k_b2 = jax.random.split(key, 5)

    N, Cin, H, W = 2, 4, 16, 16
    C1, C2 = 8, 16

    x = jax.random.normal(k_x, (N, Cin, H, W), dtype=jnp.float32)
    params = {
        "w1": 0.1 * jax.random.normal(k_w1, (C1, Cin, 3, 3), dtype=jnp.float32),
        "b1": 0.1 * jax.random.normal(k_b1, (C1,), dtype=jnp.float32),
        "w2": 0.1 * jax.random.normal(k_w2, (C2, C1, 3, 3), dtype=jnp.float32),
        "b2": 0.1 * jax.random.normal(k_b2, (C2,), dtype=jnp.float32),
    }

    out = jax.block_until_ready(feature_extractor_forward(x, params))
    ref = jax.block_until_ready(reference_forward(x, params))

    assert out.shape == (N, C2, H // 2, W // 2), out.shape
    np.testing.assert_allclose(np.asarray(out), np.asarray(ref), rtol=1e-4, atol=1e-4)

    print("KERNEL_OK")
</pallas_src>

<mosaic_0001>
module attributes {stable_mosaic.version = 11 : i64} {
  func.func @_fused_kernel(%arg0: i32, %arg1: memref<1x16x64xf32, #tpu.memory_space<vmem>>, %arg2: memref<3x16x16xf32, #tpu.memory_space<vmem>>, %arg3: memref<3x64x128xf32, #tpu.memory_space<vmem>>, %arg4: memref<1x128xf32, #tpu.memory_space<vmem>>, %arg5: memref<3x128x256xf32, #tpu.memory_space<vmem>>, %arg6: memref<1x256xf32, #tpu.memory_space<vmem>>, %arg7: memref<8x16xf32, #tpu.memory_space<vmem>>, %arg8: memref<256x128xf32, #tpu.memory_space<vmem>>, %arg9: memref<1x8x128xf32, #tpu.memory_space<vmem>>) attributes {dimension_semantics = [#tpu.dimension_semantics<parallel>], iteration_bounds = array<i64: 2>, scalar_prefetch = 0 : i64, scratch_operands = 0 : i64, tpu.core_type = #tpu.core_type<tc>, window_params = [{transform_indices = @transform_0, window_bounds = array<i64: 1, 16, 64>}, {pipeline_mode = #tpu.pipeline_mode<synchronous>, transform_indices = @transform_1, window_bounds = array<i64: 3, 16, 16>}, {pipeline_mode = #tpu.pipeline_mode<synchronous>, transform_indices = @transform_2, window_bounds = array<i64: 3, 64, 128>}, {pipeline_mode = #tpu.pipeline_mode<synchronous>, transform_indices = @transform_3, window_bounds = array<i64: 1, 128>}, {pipeline_mode = #tpu.pipeline_mode<synchronous>, transform_indices = @transform_4, window_bounds = array<i64: 3, 128, 256>}, {pipeline_mode = #tpu.pipeline_mode<synchronous>, transform_indices = @transform_5, window_bounds = array<i64: 1, 256>}, {pipeline_mode = #tpu.pipeline_mode<synchronous>, transform_indices = @transform_6, window_bounds = array<i64: 8, 16>}, {pipeline_mode = #tpu.pipeline_mode<synchronous>, transform_indices = @transform_7, window_bounds = array<i64: 256, 128>}, {transform_indices = @transform_8, window_bounds = array<i64: 1, 8, 128>}]} {
    %c0 = arith.constant 0 : index
    %c0_0 = arith.constant 0 : index
    %c0_1 = arith.constant 0 : index
    %0 = vector.load %arg1[%c0, %c0_0, %c0_1] : memref<1x16x64xf32, #tpu.memory_space<vmem>>, vector<1x16x64xf32>
    %1 = vector.shape_cast %0 : vector<1x16x64xf32> to vector<16x64xf32>
    %c0_2 = arith.constant 0 : index
    %c0_3 = arith.constant 0 : index
    %2 = vector.load %arg4[%c0_2, %c0_3] : memref<1x128xf32, #tpu.memory_space<vmem>>, vector<1x128xf32>
    %3 = vector.shape_cast %2 : vector<1x128xf32> to vector<1x128xf32>
    %4 = vector.broadcast %3 : vector<1x128xf32> to vector<16x128xf32>
    %c0_4 = arith.constant 0 : index
    %c0_5 = arith.constant 0 : index
    %c0_6 = arith.constant 0 : index
    %5 = vector.load %arg2[%c0_4, %c0_5, %c0_6] : memref<3x16x16xf32, #tpu.memory_space<vmem>>, vector<1x16x16xf32>
    %6 = vector.shape_cast %5 : vector<1x16x16xf32> to vector<16x16xf32>
    %cst = arith.constant dense<0.000000e+00> : vector<16x64xf32>
    %7 = tpu.matmul %6, %1, %cst {dimension_numbers = #tpu.dot_dimension_numbers<[1], [0], [0], [1], [0, 0, 1, 1], [], []>} : vector<16x16xf32>, vector<16x64xf32>, vector<16x64xf32> -> vector<16x64xf32>
    %c0_7 = arith.constant 0 : index
    %c0_8 = arith.constant 0 : index
    %c0_9 = arith.constant 0 : index
    %8 = vector.load %arg3[%c0_7, %c0_8, %c0_9] : memref<3x64x128xf32, #tpu.memory_space<vmem>>, vector<1x64x128xf32>
    %9 = vector.shape_cast %8 : vector<1x64x128xf32> to vector<64x128xf32>
    %cst_10 = arith.constant dense<0.000000e+00> : vector<16x128xf32>
    %10 = tpu.matmul %7, %9, %cst_10 {dimension_numbers = #tpu.dot_dimension_numbers<[1], [0], [0], [1], [0, 0, 1, 1], [], []>} : vector<16x64xf32>, vector<64x128xf32>, vector<16x128xf32> -> vector<16x128xf32>
    %11 = arith.addf %4, %10 : vector<16x128xf32>
    %c1 = arith.constant 1 : index
    %c0_11 = arith.constant 0 : index
    %c0_12 = arith.constant 0 : index
    %12 = vector.load %arg2[%c1, %c0_11, %c0_12] : memref<3x16x16xf32, #tpu.memory_space<vmem>>, vector<1x16x16xf32>
    %13 = vector.shape_cast %12 : vector<1x16x16xf32> to vector<16x16xf32>
    %cst_13 = arith.constant dense<0.000000e+00> : vector<16x64xf32>
    %14 = tpu.matmul %13, %1, %cst_13 {dimension_numbers = #tpu.dot_dimension_numbers<[1], [0], [0], [1], [0, 0, 1, 1], [], []>} : vector<16x16xf32>, vector<16x64xf32>, vector<16x64xf32> -> vector<16x64xf32>
    %c1_14 = arith.constant 1 : index
    %c0_15 = arith.constant 0 : index
    %c0_16 = arith.constant 0 : index
    %15 = vector.load %arg3[%c1_14, %c0_15, %c0_16] : memref<3x64x128xf32, #tpu.memory_space<vmem>>, vector<1x64x128xf32>
    %16 = vector.shape_cast %15 : vector<1x64x128xf32> to vector<64x128xf32>
    %cst_17 = arith.constant dense<0.000000e+00> : vector<16x128xf32>
    %17 = tpu.matmul %14, %16, %cst_17 {dimension_numbers = #tpu.dot_dimension_numbers<[1], [0], [0], [1], [0, 0, 1, 1], [], []>} : vector<16x64xf32>, vector<64x128xf32>, vector<16x128xf32> -> vector<16x128xf32>
    %18 = arith.addf %11, %17 : vector<16x128xf32>
    %c2 = arith.constant 2 : index
    %c0_18 = arith.constant 0 : index
    %c0_19 = arith.constant 0 : index
    %19 = vector.load %arg2[%c2, %c0_18, %c0_19] : memref<3x16x16xf32, #tpu.memory_space<vmem>>, vector<1x16x16xf32>
    %20 = vector.shape_cast %19 : vector<1x16x16xf32> to vector<16x16xf32>
    %cst_20 = arith.constant dense<0.000000e+00> : vector<16x64xf32>
    %21 = tpu.matmul %20, %1, %cst_20 {dimension_numbers = #tpu.dot_dimension_numbers<[1], [0], [0], [1], [0, 0, 1, 1], [], []>} : vector<16x16xf32>, vector<16x64xf32>, vector<16x64xf32> -> vector<16x64xf32>
    %c2_21 = arith.constant 2 : index
    %c0_22 = arith.constant 0 : index
    %c0_23 = arith.constant 0 : index
    %22 = vector.load %arg3[%c2_21, %c0_22, %c0_23] : memref<3x64x128xf32, #tpu.memory_space<vmem>>, vector<1x64x128xf32>
    %23 = vector.shape_cast %22 : vector<1x64x128xf32> to vector<64x128xf32>
    %cst_24 = arith.constant dense<0.000000e+00> : vector<16x128xf32>
    %24 = tpu.matmul %21, %23, %cst_24 {dimension_numbers = #tpu.dot_dimension_numbers<[1], [0], [0], [1], [0, 0, 1, 1], [], []>} : vector<16x64xf32>, vector<64x128xf32>, vector<16x128xf32> -> vector<16x128xf32>
    %25 = arith.addf %18, %24 : vector<16x128xf32>
    %cst_25 = arith.constant 0.000000e+00 : f32
    %26 = vector.broadcast %cst_25 : f32 to vector<16x128xf32>
    %27 = arith.maximumf %25, %26 : vector<16x128xf32>
    %c0_26 = arith.constant 0 : index
    %c0_27 = arith.constant 0 : index
    %28 = vector.load %arg6[%c0_26, %c0_27] : memref<1x256xf32, #tpu.memory_space<vmem>>, vector<1x256xf32>
    %29 = vector.shape_cast %28 : vector<1x256xf32> to vector<1x256xf32>
    %30 = vector.broadcast %29 : vector<1x256xf32> to vector<16x256xf32>
    %c0_28 = arith.constant 0 : index
    %c0_29 = arith.constant 0 : index
    %c0_30 = arith.constant 0 : index
    %31 = vector.load %arg2[%c0_28, %c0_29, %c0_30] : memref<3x16x16xf32, #tpu.memory_space<vmem>>, vector<1x16x16xf32>
    %32 = vector.shape_cast %31 : vector<1x16x16xf32> to vector<16x16xf32>
    %cst_31 = arith.constant dense<0.000000e+00> : vector<16x128xf32>
    %33 = tpu.matmul %32, %27, %cst_31 {dimension_numbers = #tpu.dot_dimension_numbers<[1], [0], [0], [1], [0, 0, 1, 1], [], []>} : vector<16x16xf32>, vector<16x128xf32>, vector<16x128xf32> -> vector<16x128xf32>
    %c0_32 = arith.constant 0 : index
    %c0_33 = arith.constant 0 : index
    %c0_34 = arith.constant 0 : index
    %34 = vector.load %arg5[%c0_32, %c0_33, %c0_34] : memref<3x128x256xf32, #tpu.memory_space<vmem>>, vector<1x128x256xf32>
    %35 = vector.shape_cast %34 : vector<1x128x256xf32> to vector<128x256xf32>
    %cst_35 = arith.constant dense<0.000000e+00> : vector<16x256xf32>
    %36 = tpu.matmul %33, %35, %cst_35 {dimension_numbers = #tpu.dot_dimension_numbers<[1], [0], [0], [1], [0, 0, 1, 1], [], []>} : vector<16x128xf32>, vector<128x256xf32>, vector<16x256xf32> -> vector<16x256xf32>
    %37 = arith.addf %30, %36 : vector<16x256xf32>
    %c1_36 = arith.constant 1 : index
    %c0_37 = arith.constant 0 : index
    %c0_38 = arith.constant 0 : index
    %38 = vector.load %arg2[%c1_36, %c0_37, %c0_38] : memref<3x16x16xf32, #tpu.memory_space<vmem>>, vector<1x16x16xf32>
    %39 = vector.shape_cast %38 : vector<1x16x16xf32> to vector<16x16xf32>
    %cst_39 = arith.constant dense<0.000000e+00> : vector<16x128xf32>
    %40 = tpu.matmul %39, %27, %cst_39 {dimension_numbers = #tpu.dot_dimension_numbers<[1], [0], [0], [1], [0, 0, 1, 1], [], []>} : vector<16x16xf32>, vector<16x128xf32>, vector<16x128xf32> -> vector<16x128xf32>
    %c1_40 = arith.constant 1 : index
    %c0_41 = arith.constant 0 : index
    %c0_42 = arith.constant 0 : index
    %41 = vector.load %arg5[%c1_40, %c0_41, %c0_42] : memref<3x128x256xf32, #tpu.memory_space<vmem>>, vector<1x128x256xf32>
    %42 = vector.shape_cast %41 : vector<1x128x256xf32> to vector<128x256xf32>
    %cst_43 = arith.constant dense<0.000000e+00> : vector<16x256xf32>
    %43 = tpu.matmul %40, %42, %cst_43 {dimension_numbers = #tpu.dot_dimension_numbers<[1], [0], [0], [1], [0, 0, 1, 1], [], []>} : vector<16x128xf32>, vector<128x256xf32>, vector<16x256xf32> -> vector<16x256xf32>
    %44 = arith.addf %37, %43 : vector<16x256xf32>
    %c2_44 = arith.constant 2 : index
    %c0_45 = arith.constant 0 : index
    %c0_46 = arith.constant 0 : index
    %45 = vector.load %arg2[%c2_44, %c0_45, %c0_46] : memref<3x16x16xf32, #tpu.memory_space<vmem>>, vector<1x16x16xf32>
    %46 = vector.shape_cast %45 : vector<1x16x16xf32> to vector<16x16xf32>
    %cst_47 = arith.constant dense<0.000000e+00> : vector<16x128xf32>
    %47 = tpu.matmul %46, %27, %cst_47 {dimension_numbers = #tpu.dot_dimension_numbers<[1], [0], [0], [1], [0, 0, 1, 1], [], []>} : vector<16x16xf32>, vector<16x128xf32>, vector<16x128xf32> -> vector<16x128xf32>
    %c2_48 = arith.constant 2 : index
    %c0_49 = arith.constant 0 : index
    %c0_50 = arith.constant 0 : index
    %48 = vector.load %arg5[%c2_48, %c0_49, %c0_50] : memref<3x128x256xf32, #tpu.memory_space<vmem>>, vector<1x128x256xf32>
    %49 = vector.shape_cast %48 : vector<1x128x256xf32> to vector<128x256xf32>
    %cst_51 = arith.constant dense<0.000000e+00> : vector<16x256xf32>
    %50 = tpu.matmul %47, %49, %cst_51 {dimension_numbers = #tpu.dot_dimension_numbers<[1], [0], [0], [1], [0, 0, 1, 1], [], []>} : vector<16x128xf32>, vector<128x256xf32>, vector<16x256xf32> -> vector<16x256xf32>
    %51 = arith.addf %44, %50 : vector<16x256xf32>
    %cst_52 = arith.constant 0.000000e+00 : f32
    %52 = vector.broadcast %cst_52 : f32 to vector<16x256xf32>
    %53 = arith.maximumf %51, %52 : vector<16x256xf32>
    %c0_53 = arith.constant 0 : index
    %c0_54 = arith.constant 0 : index
    %54 = vector.load %arg7[%c0_53, %c0_54] : memref<8x16xf32, #tpu.memory_space<vmem>>, vector<8x16xf32>
    %cst_55 = arith.constant dense<0.000000e+00> : vector<8x256xf32>
    %55 = tpu.matmul %54, %53, %cst_55 {dimension_numbers = #tpu.dot_dimension_numbers<[1], [0], [0], [1], [0, 0, 1, 1], [], []>} : vector<8x16xf32>, vector<16x256xf32>, vector<8x256xf32> -> vector<8x256xf32>
    %c0_56 = arith.constant 0 : index
    %c0_57 = arith.constant 0 : index
    %56 = vector.load %arg8[%c0_56, %c0_57] : memref<256x128xf32, #tpu.memory_space<vmem>>, vector<256x128xf32>
    %cst_58 = arith.constant dense<0.000000e+00> : vector<8x128xf32>
    %57 = tpu.matmul %55, %56, %cst_58 {dimension_numbers = #tpu.dot_dimension_numbers<[1], [0], [0], [1], [0, 0, 1, 1], [], []>} : vector<8x256xf32>, vector<256x128xf32>, vector<8x128xf32> -> vector<8x128xf32>
    %c0_59 = arith.constant 0 : index
    %c0_60 = arith.constant 0 : index
    %c0_61 = arith.constant 0 : index
    %58 = vector.load %arg9[%c0_59, %c0_60, %c0_61] : memref<1x8x128xf32, #tpu.memory_space<vmem>>, vector<1x8x128xf32>
    %59 = vector.shape_cast %58 : vector<1x8x128xf32> to vector<8x128xf32>
    %60 = vector.shape_cast %57 : vector<8x128xf32> to vector<1x8x128xf32>
    tpu.vector_store %arg9[%c0_59, %c0_60, %c0_61], %60 {strides = array<i32>} : memref<1x8x128xf32, #tpu.memory_space<vmem>>, vector<1x8x128xf32>,
    return
  }
  func.func @transform_0(%arg0: i32) -> (i32, i32, i32) {
    %c0_i32 = arith.constant 0 : i32
    %c0_i32_0 = arith.constant 0 : i32
    %c0_i32_1 = arith.constant 0 : i32
    return %arg0, %c0_i32, %c0_i32_0 : i32, i32, i32
  }
  func.func @transform_1(%arg0: i32) -> (i32, i32, i32) {
    %c0_i32 = arith.constant 0 : i32
    %c0_i32_0 = arith.constant 0 : i32
    %c0_i32_1 = arith.constant 0 : i32
    %c0_i32_2 = arith.constant 0 : i32
    return %c0_i32, %c0_i32_0, %c0_i32_1 : i32, i32, i32
  }
  func.func @transform_2(%arg0: i32) -> (i32, i32, i32) {
    %c0_i32 = arith.constant 0 : i32
    %c0_i32_0 = arith.constant 0 : i32
    %c0_i32_1 = arith.constant 0 : i32
    %c0_i32_2 = arith.constant 0 : i32
    return %c0_i32, %c0_i32_0, %c0_i32_1 : i32, i32, i32
  }
  func.func @transform_3(%arg0: i32) -> (i32, i32) {
    %c0_i32 = arith.constant 0 : i32
    %c0_i32_0 = arith.constant 0 : i32
    %c0_i32_1 = arith.constant 0 : i32
    return %c0_i32, %c0_i32_0 : i32, i32
  }
  func.func @transform_4(%arg0: i32) -> (i32, i32, i32) {
    %c0_i32 = arith.constant 0 : i32
    %c0_i32_0 = arith.constant 0 : i32
    %c0_i32_1 = arith.constant 0 : i32
    %c0_i32_2 = arith.constant 0 : i32
    return %c0_i32, %c0_i32_0, %c0_i32_1 : i32, i32, i32
  }
  func.func @transform_5(%arg0: i32) -> (i32, i32) {
    %c0_i32 = arith.constant 0 : i32
    %c0_i32_0 = arith.constant 0 : i32
    %c0_i32_1 = arith.constant 0 : i32
    return %c0_i32, %c0_i32_0 : i32, i32
  }
  func.func @transform_6(%arg0: i32) -> (i32, i32) {
    %c0_i32 = arith.constant 0 : i32
    %c0_i32_0 = arith.constant 0 : i32
    %c0_i32_1 = arith.constant 0 : i32
    return %c0_i32, %c0_i32_0 : i32, i32
  }
  func.func @transform_7(%arg0: i32) -> (i32, i32) {
    %c0_i32 = arith.constant 0 : i32
    %c0_i32_0 = arith.constant 0 : i32
    %c0_i32_1 = arith.constant 0 : i32
    return %c0_i32, %c0_i32_0 : i32, i32
  }
  func.func @transform_8(%arg0: i32) -> (i32, i32, i32) {
    %c0_i32 = arith.constant 0 : i32
    %c0_i32_0 = arith.constant 0 : i32
    %c0_i32_1 = arith.constant 0 : i32
    return %arg0, %c0_i32, %c0_i32_0 : i32, i32, i32
  }
}

</mosaic_0001>

<bundles_post_ra>
// kernel: tpu_custom_call.1
= control target key start
LH: loop header
LB: loop body
LE: loop exit
PB: predicated region body
PF: predicated region fallthrough
CT: control target
= control target key end

     0   :  { %s2976_s0 = inlined_call_operand.hbm [shape: f32[2,16,64], index: 0, kind: input, shape index: {}]   ;;  %s2977_s1 = inlined_call_operand.hbm [shape: f32[3,16,16], index: 1, kind: input, shape index: {}]   ;;  %s2978_s2 = inlined_call_operand.hbm [shape: f32[3,64,128], index: 2, kind: input, shape index: {}]   ;;  %s2979_s3 = inlined_call_operand.vmem [shape: f32[1,128], index: 3, kind: input, shape index: {}]   ;;  %s2980_s4 = inlined_call_operand.hbm [shape: f32[3,128,256], index: 4, kind: input, shape index: {}]   ;;  %s2981_s5 = inlined_call_operand.vmem [shape: f32[1,256], index: 5, kind: input, shape index: {}]   ;;  %s2982_s6 = inlined_call_operand.vmem [shape: f32[8,16], index: 6, kind: input, shape index: {}]   ;;  %s2983_s7 = inlined_call_operand.hbm [shape: f32[256,128], index: 7, kind: input, shape index: {}]   ;;  %s2984_s8 = inlined_call_operand.hbm [shape: f32[2,8,128], index: 8, kind: output, shape index: {}]  }
   0x1   :  { %2993 = sst [smem:[#allocation17_spill]] %s2977_s1 }
   0x2   :  { %13 = vsyncpa [#allocation3], 0 }
   0x3   :  { %15 = vsyncpa [#allocation3 + $0x1], 0 }
   0x4   :  { %16 = vsyncpa [#allocation6], 0 }
   0x5   :  { %17 = vsyncpa [#allocation9], 0 }
   0x6   :  { %18 = vsyncpa [#allocation4], 0 }
   0x7   :  { %20 = vsyncpa [#allocation4 + $0x1], 0  ;;  %s2621_s27 = smov 0   ;;  %s2623_s28 = smov 0  }
   0x8   :  { %s2625_s29 = smov 0   ;;  %s2627_s30 = smov 0  }
   0x9 LB: > { %s2642_s9 = sadd.s32 4294967295, %s2563_s30   ;;  %s1803_s10 = sadd.s32 4294967294, %s2563_s30   ;;  %s2563_s30 = sphi %s2627_s30, %s3018_s30   ;;  %s2559_s29 = sphi %s2625_s29, %s3017_s29   ;;  %s2555_s28 = sphi %s2623_s28, %s3016_s28   ;;  %s2551_s27 = sphi %s2621_s27, %s3015_s27  }
   0xa   : > { %p46_p0 = scmp.ne.s32.totalorder %s2555_s28, %s2551_s27  ;;  %p2985_p1 = scmp.eq.s32.totalorder %s2642_s9, 0 }
   0xb   : > { %p223_p3 = scmp.eq.s32.totalorder %s1803_s10, 1  ;;  %p1804_p5 = scmp.ge.s32.totalorder %s2563_s30, 1 }
   0xc   : > { %p2651_p4 = por %p2985_p1, %p46_p0  ;;  %p230_p7 = scmp.lt.s32.totalorder %s2563_s30, 3 }
   0xd   : > { %p2656_p6 = por %p223_p3, %p46_p0  ;;  %s2565_s14 = smov [#allocation5]  }
   0xe   : > { %s2994_s11 = scalar_select %p2651_p4, 1, 0 }
   0xf   : > { %s2995_s12 = scalar_select %p2656_p6, 1, 0 }
  0x10   : > { %p2661_p8 = pnand %p1804_p5, %p230_p7  ;;  %s242_s15 = sshll.u32 %s2565_s14, 4  ;;  %s2665_s15 = int_to_ptr.vmem [resolvable:$true] %s242_s15 }
  0x11   : > { %2996 = sst [smem:[#allocation16_spill]] %s2995_s12  ;;  %s2566_s17 = smov [#allocation8]  }
  0x12   : > { %s2997_s13 = scalar_select %p2661_p8, 1, 0 }
  0x13   : > { %p2275_p9 = pneg %p2661_p8  ;;  %s271_s18 = sshll.u32 %s2566_s17, 4  ;;  %s2676_s18 = int_to_ptr.vmem [resolvable:$true] %s271_s18 }
  0x14   : > { %s2999_s1 = sld [smem:[#allocation17_spill]] }
  0x15   : > { %p2672_p11 = pnand %p2275_p9, %p2985_p1 }
  0x17   : > { %p2686_p13 = pneg %p2672_p11 }
  0x1a   : > { %s2347_s21 = scalar_lea.hbm %s2999_s1, 768 }
  0x1b   : > { %p2348_p12 = scmp.ne.s32.totalorder %s2999_s1, %s2347_s21  ;;  %p2354_p5 = scmp.lt.u32.totalorder %s2347_s21, %s2999_s1 }
  0x1d   : > { %p2350_p0 = pnand %p2686_p13, %p2348_p12 }
  0x1f   : > { %p2351_p3 = pneg %p2350_p0 }
  0x21   : > { %p2356_p7 = pnand %p2354_p5, %p2351_p3 }
  0x23   : > { %2359 = shalt.err (!%p2356_p7)
}
  0x24   : > { %s2360_s10 = scalar_lea.vmem %s2665_s15, 768  ;;  %p2368_p2 = scmp.lt.s32.totalorder %s2665_s15, %s2665_s15 }
  0x25   : > { %p2361_p9 = scmp.ne.s32.totalorder %s2665_s15, %s2360_s10  ;;  %p2369_p6 = scmp.lt.s32.totalorder %s2360_s10, %s2360_s10 }
  0x27   : > { %p2363_p10 = pnand %p2361_p9, %p2686_p13  ;;  %p2370_p12 = por %p2369_p6, %p2368_p2 }
  0x29   : > { %p2364_p1 = pneg %p2363_p10 }
  0x2b   : > { %p2371_p0 = pnand %p2370_p12, %p2364_p1 }
  0x2d   : > { %2374 = shalt.err (!%p2371_p0)
}
  0x2e   : > { %s2987_s14 = smov 128   ;;  %s2989_s17 = smov 8  }
  0x2f   : > { %2278 = dma.hbm_to_vmem [thread:$0]  (!%p2672_p11), %s2999_s1, 768, %s2665_s15, [#allocation6], %s2987_s14, %s2987_s14, %s2989_s17  }
  0x30   : > { %s2375_s23 = scalar_lea.hbm %s2980_s4, 12288 }
  0x31   : > { %p2376_p1 = scmp.ne.s32.totalorder %s2980_s4, %s2375_s23  ;;  %p2382_p10 = scmp.lt.u32.totalorder %s2375_s23, %s2980_s4 }
  0x33   : > { %p2378_p2 = pnand %p2376_p1, %p2686_p13 }
  0x35   : > { %p2379_p6 = pneg %p2378_p2 }
  0x37   : > { %p2384_p3 = pnand %p2382_p10, %p2379_p6 }
  0x39   : > { %2387 = shalt.err (!%p2384_p3)
}
  0x3a   : > { %s2388_s15 = scalar_lea.vmem %s2676_s18, 12288  ;;  %p2396_p12 = scmp.lt.s32.totalorder %s2676_s18, %s2676_s18 }
  0x3b   : > { %p2389_p5 = scmp.ne.s32.totalorder %s2676_s18, %s2388_s15  ;;  %p2397_p0 = scmp.lt.s32.totalorder %s2388_s15, %s2388_s15 }
  0x3d   : > { %p2391_p7 = pnand %p2389_p5, %p2686_p13  ;;  %p2398_p1 = por %p2397_p0, %p2396_p12 }
  0x3f   : > { %p2392_p9 = pneg %p2391_p7 }
  0x41   : > { %p2399_p2 = pnand %p2398_p1, %p2392_p9 }
  0x43   : > { %2402 = shalt.err (!%p2399_p2)
}
  0x44   : > { %s2569_s19 = smov 256   ;;  %s2570_s12 = smov 16  }
  0x45   : > { %2284 = dma.hbm_to_vmem [thread:$0]  (!%p2672_p11), %s2980_s4, 12288, %s2676_s18, [#allocation9], %s2569_s19, %s2569_s19, %s2570_s12  }
  0x46   : > { %s2571_s22 = smov [#allocation7]   ;;  %s2572_s25 = smov [#allocation10]  }
  0x47   : > { %s255_s23 = sshll.u32 %s2571_s22, 4  ;;  %s290_s26 = sshll.u32 %s2572_s25, 4  ;;  %s256_s23 = int_to_ptr.vmem [resolvable:$true] %s255_s23  ;;  %s2733_s26 = int_to_ptr.vmem [resolvable:$true] %s290_s26 }
  0x48   : > { %s2403_s14 = scalar_lea.hbm %s2978_s2, 3072 }
  0x49   : > { %p2404_p6 = scmp.ne.s32.totalorder %s2978_s2, %s2403_s14  ;;  %p2410_p5 = scmp.lt.u32.totalorder %s2403_s14, %s2978_s2 }
  0x4b   : > { %p2406_p10 = pnand %p2404_p6, %p2686_p13 }
  0x4d   : > { %p2407_p3 = pneg %p2406_p10 }
  0x4f   : > { %p2412_p7 = pnand %p2410_p5, %p2407_p3 }
  0x51   : > { %2415 = shalt.err (!%p2412_p7)
}
  0x52   : > { %s2416_s19 = scalar_lea.vmem %s256_s23, 3072  ;;  %p2424_p1 = scmp.lt.s32.totalorder %s256_s23, %s256_s23 }
  0x53   : > { %p2417_p9 = scmp.ne.s32.totalorder %s256_s23, %s2416_s19  ;;  %p2425_p2 = scmp.lt.s32.totalorder %s2416_s19, %s2416_s19 }
  0x55   : > { %p2419_p12 = pnand %p2417_p9, %p2686_p13  ;;  %p2426_p4 = por %p2425_p2, %p2424_p1 }
  0x57   : > { %p2420_p0 = pneg %p2419_p12 }
  0x59   : > { %p2427_p8 = pnand %p2426_p4, %p2420_p0 }
  0x5b   : > { %2430 = shalt.err (!%p2427_p8)
}
  0x5c   : > { %s3001_s1 = smov 8   ;;  %s3002_s17 = smov 128  }
  0x5d   : > { %2281 = dma.hbm_to_vmem [thread:$0]  (!%p2672_p11), %s2978_s2, 3072, %s256_s23, [#allocation6], %s3002_s17, %s3002_s17, %s3001_s1  }
  0x5e   : > { %s2431_s25 = scalar_lea.hbm %s2983_s7, 4096 }
  0x5f   : > { %p2432_p6 = scmp.ne.s32.totalorder %s2983_s7, %s2431_s25  ;;  %p2438_p10 = scmp.lt.u32.totalorder %s2431_s25, %s2983_s7 }
  0x61   : > { %p2434_p4 = pnand %p2432_p6, %p2686_p13 }
  0x63   : > { %p2435_p8 = pneg %p2434_p4 }
  0x65   : > { %p2440_p3 = pnand %p2438_p10, %p2435_p8 }
  0x67   : > { %2443 = shalt.err (!%p2440_p3)
}
  0x68   : > { %s2444_s23 = scalar_lea.vmem %s2733_s26, 4096  ;;  %p2452_p12 = scmp.lt.s32.totalorder %s2733_s26, %s2733_s26 }
  0x69   : > { %p2445_p5 = scmp.ne.s32.totalorder %s2733_s26, %s2444_s23  ;;  %p2453_p0 = scmp.lt.s32.totalorder %s2444_s23, %s2444_s23 }
  0x6b   : > { %p2447_p7 = pnand %p2445_p5, %p2686_p13  ;;  %p2454_p1 = por %p2453_p0, %p2452_p12 }
  0x6d   : > { %p2448_p9 = pneg %p2447_p7 }
  0x6f   : > { %p2455_p2 = pnand %p2454_p1, %p2448_p9 }
  0x71   : > { %2458 = shalt.err (!%p2455_p2)
}
  0x72   : > { %2287 = dma.hbm_to_vmem [thread:$0]  (!%p2672_p11), %s2983_s7, 4096, %s2733_s26, [#allocation9], %s3002_s17, %s3002_s17, %s3001_s1  }
  0x73   : > { %s2783_s16 = sadd.s32 1, %s2563_s30   ;;  %s33_s14 = sadd.s32 1, %s2559_s29 }
  0x74   : > { %s30_s24 = ssub.s32 %s2563_s30, %s2783_s16  ;;  %p40_p6 = scmp.ne.s32.totalorder %s2559_s29, %s2555_s28 }
  0x75   : > { %p31_p13 = scmp.eq.s32.totalorder %s30_s24, 0  ;;  %p41_p4 = scmp.eq.s32.totalorder %s2563_s30, 0 }
  0x76   : > { %p3003_p10 = scmp.eq.s32.totalorder %s2642_s9, 1  ;;  %p2300_p5 = scmp.lt.s32.totalorder %s2563_s30, 2 }
  0x77   : > { %s2792_s21 = scalar_select %p31_p13, %s2559_s29, %s33_s14  }
  0x78   : > { %p42_p8 = por %p41_p4, %p40_p6  ;;  %p2796_p3 = por %p3003_p10, %p40_p6 }
  0x79   : > { %s304_s25 = sand.u32 1, %s2559_s29   ;;  %s1844_s26 = sshll.u32 %s2563_s30, 8 }
  0x7a   : > { %s1810_s10 = sshll.u32 %s304_s25, 4  ;;  %s2806_s18 = scalar_lea.hbm %s2976_s0, %s1844_s26 }
  0x7b   : > { %s308_s23 = scalar_lea.vmem [#allocation2], %s1810_s10  ;;  %p2810_p11 = pnand %p2300_p5, %p42_p8 }
  0x7c   : > { %s315_s19 = sshll.u32 %s308_s23, 4  ;;  %s2814_s24 = scalar_lea.sflag [#allocation3], %s304_s25  ;;  %s2808_s19 = int_to_ptr.vmem [resolvable:$true] %s315_s19 }
  0x7d   : > { %s2459_s14 = scalar_lea.hbm %s2806_s18, 256  ;;  %p2461_p9 = pneg %p2810_p11 }
  0x7e   : > { %p2460_p7 = scmp.ne.s32.totalorder %s2806_s18, %s2459_s14  ;;  %s2464_s15 = scalar_lea.hbm %s2976_s0, 512 }
  0x7f   : > { %p2465_p1 = scmp.lt.u32.totalorder %s2806_s18, %s2976_s0  ;;  %p2466_p2 = scmp.lt.u32.totalorder %s2464_s15, %s2459_s14 }
  0x80   : > { %p2462_p12 = pnand %p2461_p9, %p2460_p7  ;;  %p2468_p6 = scmp.lt.u32.totalorder %s2459_s14, %s2806_s18 }
  0x81   : > { %p2467_p13 = por %p2466_p2, %p2465_p1 }
  0x82   : > { %p2463_p0 = pneg %p2462_p12 }
  0x83   : > { %p2469_p4 = por %p2468_p6, %p2467_p13 }
  0x85   : > { %p2470_p8 = pnand %p2469_p4, %p2463_p0 }
  0x87   : > { %2473 = shalt.err (!%p2470_p8)
}
  0x88   : > { %s2474_s25 = scalar_lea.vmem %s2808_s19, 256  ;;  %s2573_s10 = smov [#allocation2]  }
  0x89   : > { %p2475_p10 = scmp.ne.s32.totalorder %s2808_s19, %s2474_s25  ;;  %s2479_s26 = sshll.u32 %s2573_s10, 4  ;;  %s2480_s26 = int_to_ptr.vmem [resolvable:$false] %s2479_s26 }
  0x8a   : > { %s2481_s20 = scalar_lea.vmem %s2480_s26, 512  ;;  %p2482_p12 = scmp.lt.s32.totalorder %s2808_s19, %s2480_s26 }
  0x8b   : > { %p2477_p5 = pnand %p2475_p10, %p2461_p9  ;;  %p2483_p1 = scmp.lt.s32.totalorder %s2481_s20, %s2474_s25 }
  0x8d   : > { %p2478_p7 = pneg %p2477_p5  ;;  %p2484_p2 = por %p2483_p1, %p2482_p12 }
  0x8f   : > { %p2485_p13 = pnand %p2484_p2, %p2478_p7 }
  0x91   : > { %2488 = shalt.err (!%p2485_p13)
}
  0x92   : > { %2291 = dma.hbm_to_vmem [thread:$0]  (!%p2810_p11), %s2806_s18, 256, %s2808_s19, %s2814_s24, %s3002_s17, %s3002_s17, %s3001_s1  }
  0x93   : > { %p3006_p9 = scmp.ne.s32.totalorder %s2997_s13, 0 }
  0x94   : > { %s2848_s14 = sand.u32 (!%p3006_p9), 1, %s2555_s28   ;;  %p3007_p0 = scmp.ne.s32.totalorder (!%p3006_p9), %s2994_s11, 0 }
  0x95   : > { %327 = sbr.rel (%p3006_p9) target bundleno = 1990 (0x7c6), region = 52  ;;  %s1814_s15 = sshll.u32 (!%p3006_p9), %s2848_s14, 4 }
  0x96   : > { %s330_s23 = scalar_lea.sflag (!%p3006_p9), [#allocation3], %s2848_s14  ;;  %s333_s25 = scalar_lea.vmem (!%p3006_p9), [#allocation2], %s1814_s15 }
  0x9c   : > { %2534 = dma.done.wait (%p3007_p0), %s330_s23, 256  }
  0x9d   : > { %2536 = vsyncadd (%p3007_p0), %s330_s23, 4294967040  ;;  %p3008_p6 = scmp.eq.s32.totalorder %s2642_s9, 0 }
  0x9f   : > { %2538 = dma.done.wait (%p3008_p6), [#allocation6], 3840   ;;  %p3009_p11 = pmov %p3008_p6 }
  0xa0   : > { %p3010_p4 = pmov %p3008_p6 }
  0xa1   : > { %2540 = vsyncadd (%p3009_p11), [#allocation6], 4294963456 }
  0xa2   : > { %2542 = dma.done.wait (%p3010_p4), [#allocation9], 16384   ;;  %p3011_p8 = pmov %p3010_p4 }
  0xa3   : > { %vm393_vm0 = vcmask 130048   ;;  %v382_v0 = vld [vmem:[%s333_s25] sm:$0xff]  ;;  %v383_v1 = vld [vmem:[%s333_s25 + $0x8] sm:$0xff]  ;;  %vm483_vm1 = vcmask 523264   ;;  %s1819_s12 = sshll.u32 %s2848_s14, 3  ;;  %s1841_s24 = sshll.u32 %s2642_s9, 7 }
  0xa4   : > { %2544 = vsyncadd (%p3011_p8), [#allocation9], 4294950912  ;;  %v391_v2 = vld [vmem:[#allocation5] sm:$0xff]  ;;  %v2864_v3 = vpack.c.bf16 %v383_v1, %v382_v0  ;;  %v475_v4 = vld [vmem:[#allocation7] sm:$0xff]  ;;  %s381_s10 = scalar_lea.vmem [#allocation11], %s1819_s12  ;;  %s2932_s23 = scalar_lea.hbm %s2984_s8, %s1841_s24 }
  0xa5   : > { %1938 = vmatprep.mubr.msk.f32.mxu1 %vm393_vm0, %v391_v2  ;;  %v476_v5 = vld [vmem:[#allocation7 + $0x8] sm:$0xff]  ;;  %2016 = vmatprep.mubr.msk.f32.mxu0 %vm393_vm0, %v391_v2  ;;  %v477_v7 = vld [vmem:[#allocation7 + $0x10] sm:$0xff]  ;;  %v478_v8 = vld [vmem:[#allocation7 + $0x18] sm:$0xff]  ;;  %s1695_s26 = sshll.u32 %s381_s10, 4  ;;  %s1682_s25 = scalar_lea.sflag [#allocation4], %s2848_s14  ;;  %s2934_s26 = int_to_ptr.vmem [resolvable:$true] %s1695_s26 }
  0xa6   : > { %v2037_v6 = vpack.c.bf16 %v476_v5, %v475_v4  ;;  %2034 = vmatprep.subr.bf16.mxu1 %v2864_v3  ;;  %v2870_v9 = vld [vmem:[#allocation5 + $0x8] sm:$0xff]  ;;  %v2041_v10 = vpack.c.bf16 %v478_v8, %v477_v7  ;;  %v479_v11 = vld [vmem:[#allocation7 + $0x20] sm:$0xff]  ;;  %v480_v12 = vld [vmem:[#allocation7 + $0x28] sm:$0xff]  ;;  %s2489_s11 = scalar_lea.vmem %s2934_s26, 128  ;;  %s2575_s9 = smov [#allocation11]  }
  0xa7   : > { %2036 = vmatpush3.bf16.msra.mxu1 %v2864_v3  ;;  %v2045_v13 = vpack.c.bf16 %v480_v12, %v479_v11  ;;  %v481_v14 = vld [vmem:[#allocation7 + $0x30] sm:$0xff]  ;;  %v482_v15 = vld [vmem:[#allocation7 + $0x38] sm:$0xff]  ;;  %v652_v17 = vld [vmem:[#allocation7 + $0x40] sm:$0xff]  ;;  %p2490_p10 = scmp.ne.s32.totalorder %s2934_s26, %s2489_s11  ;;  %s2493_s13 = sshll.u32 %s2575_s9, 4  ;;  %s2494_s13 = int_to_ptr.vmem [resolvable:$false] %s2493_s13 }
  0xa8   : > { %2038 = vmatprep.subr.bf16.mxu1 %v2037_v6  ;;  %v2049_v16 = vpack.c.bf16 %v482_v15, %v481_v14  ;;  %v653_v18 = vld [vmem:[#allocation7 + $0x48] sm:$0xff]  ;;  %v568_v21 = vld [vmem:[#allocation5 + $0x10] sm:$0xff]  ;;  %v654_v23 = vld [vmem:[#allocation7 + $0x50] sm:$0xff]  ;;  %s2495_s1 = scalar_lea.vmem %s2494_s13, 256  ;;  %p2496_p12 = scmp.lt.s32.totalorder %s2934_s26, %s2494_s13 }
  0xa9   : > { %v2057_v22 = vpack.c.bf16 %v653_v18, %v652_v17  ;;  %v655_v24 = vld [vmem:[#allocation7 + $0x58] sm:$0xff]  ;;  %v2879_v25 = vld [vmem:[#allocation5 + $0x18] sm:$0xff]  ;;  %v656_v27 = vld [vmem:[#allocation7 + $0x60] sm:$0xff]  ;;  %p2491_p5 = pnand %p2490_p10, %p2796_p3  ;;  %p2497_p1 = scmp.lt.s32.totalorder %s2495_s1, %s2489_s11 }
  0xaa   : > { %1939 = vmatmul.mubr.msk.f32.vlgmr.msra.gmra.mrb[0].mxu1 %vm393_vm0, %v2870_v9  ;;  %v2061_v26 = vpack.c.bf16 %v655_v24, %v654_v23  ;;  %v657_v28 = vld [vmem:[#allocation7 + $0x68] sm:$0xff]  ;;  %v658_v30 = vld [vmem:[#allocation7 + $0x70] sm:$0xff]  ;;  %v659_v31 = vld [vmem:[#allocation7 + $0x78] sm:$0xff] }
  0xab   : > { %2040 = vmatpush3.bf16.msra.mxu1 %v2037_v6  ;;  %v2065_v29 = vpack.c.bf16 %v657_v28, %v656_v27  ;;  %v2069_v32 = vpack.c.bf16 %v659_v31, %v658_v30  ;;  %v828_v33 = vld [vmem:[#allocation7 + $0x80] sm:$0xff]  ;;  %v829_v34 = vld [vmem:[#allocation7 + $0x88] sm:$0xff]  ;;  %v744_v37 = vld [vmem:[#allocation5 + $0x20] sm:$0xff]  ;;  %p2492_p7 = pneg %p2491_p5  ;;  %p2498_p2 = por %p2497_p1, %p2496_p12 }
  0xac   : > { %2042 = vmatprep.subr.bf16.mxu1 %v2041_v10  ;;  %v2077_v38 = vpack.c.bf16 %v829_v34, %v828_v33  ;;  %v830_v39 = vld [vmem:[#allocation7 + $0x90] sm:$0xff]  ;;  %v831_v40 = vld [vmem:[#allocation7 + $0x98] sm:$0xff]  ;;  %v832_v43 = vld [vmem:[#allocation7 + $0xa0] sm:$0xff] }
  0xad   : > { %v745_v41 = vld [vmem:[#allocation5 + $0x28] sm:$0xff]  ;;  %v2081_v42 = vpack.c.bf16 %v831_v40, %v830_v39  ;;  %v833_v44 = vld [vmem:[#allocation7 + $0xa8] sm:$0xff]  ;;  %v834_v46 = vld [vmem:[#allocation7 + $0xb0] sm:$0xff]  ;;  %p2499_p13 = pnand %p2498_p2, %p2492_p7 }
  0xae   : > { %v2085_v45 = vpack.c.bf16 %v833_v44, %v832_v43  ;;  %v835_v47 = vld [vmem:[#allocation7 + $0xb8] sm:$0xff]  ;;  %v1820_v51 = vld [vmem:[%s2979_s3] ss:$0 sm:$0xff]  ;;  %v1009_v57 = vld [vmem:[#allocation8 + $0x8] sm:$0xff] }
  0xaf   : > { %2044 = vmatpush3.bf16.msra.mxu1 %v2041_v10  ;;  %v2089_v48 = vpack.c.bf16 %v835_v47, %v834_v46  ;;  %v1011_v58 = vld [vmem:[#allocation8 + $0x18] sm:$0xff]  ;;  %v1008_v62 = vld [vmem:[#allocation8] sm:$0xff]  ;;  %v1010_v63 = vld [vmem:[#allocation8 + $0x10] sm:$0xff]  ;;  %v2574_v46 = vmov 0.0  }
  0xb0   : > { %2046 = vmatprep.subr.bf16.mxu1 %v2045_v13  ;;  %v2097_v61 = vpack.c.bf16 %v1011_v58, %v1009_v57  ;;  %v1013_v0 = vld [vmem:[#allocation8 + $0x28] sm:$0xff]  ;;  %v1015_v1 = vld [vmem:[#allocation8 + $0x38] sm:$0xff]  ;;  %v2099_v2 = vpack.c.bf16 %v1010_v63, %v1008_v62  ;;  %v1012_v4 = vld [vmem:[#allocation8 + $0x20] sm:$0xff] }
  0xb1   : > { %v1014_v5 = vld [vmem:[#allocation8 + $0x30] sm:$0xff]  ;;  %v1017_v6 = vld [vmem:[#allocation8 + $0x48] sm:$0xff]  ;;  %v1019_v7 = vld [vmem:[#allocation8 + $0x58] sm:$0xff] }
  0xb2   : > { %v2103_v8 = vpack.c.bf16 %v1014_v5, %v1012_v4  ;;  %v2105_v10 = vpack.c.bf16 %v1019_v7, %v1017_v6  ;;  %v1016_v11 = vld [vmem:[#allocation8 + $0x40] sm:$0xff]  ;;  %v1018_v12 = vld [vmem:[#allocation8 + $0x50] sm:$0xff]  ;;  %v1023_v14 = vld [vmem:[#allocation8 + $0x78] sm:$0xff] }
  0xb3   : > { %2048 = vmatpush3.bf16.msra.mxu1 %v2045_v13  ;;  %v1021_v13 = vld [vmem:[#allocation8 + $0x68] sm:$0xff]  ;;  %v1022_v17 = vld [vmem:[#allocation8 + $0x70] sm:$0xff]  ;;  %v1028_v28 = vld [vmem:[#allocation8 + $0xa0] sm:$0xff] }
  0xb4   : > { %2050 = vmatprep.subr.bf16.mxu1 %v2049_v16  ;;  %v2109_v15 = vpack.c.bf16 %v1023_v14, %v1021_v13  ;;  %v1025_v18 = vld [vmem:[#allocation8 + $0x88] sm:$0xff]  ;;  %v1026_v23 = vld [vmem:[#allocation8 + $0x90] sm:$0xff]  ;;  %v1035_v31 = vld [vmem:[#allocation8 + $0xd8] sm:$0xff] }
  0xb5   : > { %v1029_v24 = vld [vmem:[#allocation8 + $0xa8] sm:$0xff]  ;;  %v1032_v34 = vld [vmem:[#allocation8 + $0xc0] sm:$0xff]  ;;  %v1200_v44 = vld [vmem:[#allocation8 + $0x118] sm:$0xff] }
  0xb6   : > { %v1033_v30 = vld [vmem:[#allocation8 + $0xc8] sm:$0xff]  ;;  %v1036_v40 = vld [vmem:[#allocation8 + $0xe0] sm:$0xff] }
  0xb7   : > { %2052 = vmatpush3.bf16.msra.mxu1 %v2049_v16  ;;  %v1020_v16 = vld [vmem:[#allocation8 + $0x60] sm:$0xff]  ;;  %v2121_v33 = vpack.c.bf16 %v1035_v31, %v1033_v30  ;;  %v1198_v43 = vld [vmem:[#allocation8 + $0x108] sm:$0xff] }
  0xb8   : > { %2054 = vmatprep.subr.bf16.mxu1 %v2864_v3  ;;  %v1197_v47 = vld [vmem:[#allocation8 + $0x100] sm:$0xff]  ;;  %v1206_v58 = vld [vmem:[#allocation8 + $0x148] sm:$0xff] }
  0xb9   : > { %v1205_v63 = vld [vmem:[#allocation8 + $0x140] sm:$0xff] }
  0xba   : > { %v1209_v7 = vld [vmem:[#allocation8 + $0x160] sm:$0xff] }
  0xbb   : > { %v1213_v14 = vld [vmem:[#allocation8 + $0x180] sm:$0xff] }
  0xbc   : > { %v1225_v31 = vld [vmem:[#allocation8 + $0x1e0] sm:$0xff] }
 0x17d   : > { %v1940_v19 = vpop.f32.mrb[0].mxu1 }
 0x17e   : > { %v466_v20 = vpop.f32.mrb[1].mxu1 }
 0x17f   : > { %1957 = vmatprep.mubr.msk.f32.mxu1 %vm483_vm1, %v466_v20  ;;  %v2111_v20 = vpack.c.bf16 %v1022_v17, %v1020_v16  ;;  %v1220_v16 = vld [vmem:[#allocation8 + $0x1b8] sm:$0xff] }
 0x180   : > { %1958 = vmatmul.mubr.msk.f32.vlgmr.msra.gmra.mrb[2].mxu1 %vm483_vm1, %v1940_v19  ;;  %v1027_v19 = vld [vmem:[#allocation8 + $0x98] sm:$0xff] }
 0x181   : > { %2056 = vmatpush3.bf16.msra.mxu1 %v2864_v3  ;;  %1964 = vmatprep.mubr.msk.f32.mxu1 %vm393_vm0, %v568_v21 }
 0x182   : > { %2058 = vmatprep.subr.bf16.mxu1 %v2057_v22 }
 0x184   : > { %1965 = vmatmul.mubr.msk.f32.vlgmr.msra.gmra.mrb[4].mxu1 %vm393_vm0, %v2879_v25 }
 0x185   : > { %2060 = vmatpush3.bf16.msra.mxu1 %v2057_v22  ;;  %v1024_v22 = vld [vmem:[#allocation8 + $0x80] sm:$0xff] }
 0x186   : > { %2062 = vmatprep.subr.bf16.mxu1 %v2061_v26 }
 0x189   : > { %2064 = vmatpush3.bf16.msra.mxu1 %v2061_v26  ;;  %v2115_v26 = vpack.c.bf16 %v1026_v23, %v1024_v22  ;;  %v1224_v22 = vld [vmem:[#allocation8 + $0x1d8] sm:$0xff] }
 0x18a   : > { %2066 = vmatprep.subr.bf16.mxu1 %v2065_v29 }
 0x18d   : > { %2068 = vmatpush3.bf16.msra.mxu1 %v2065_v29  ;;  %v1030_v29 = vld [vmem:[#allocation8 + $0xb0] sm:$0xff] }
 0x18e   : > { %2070 = vmatprep.subr.bf16.mxu1 %v2069_v32 }
 0x191   : > { %2072 = vmatpush3.bf16.msra.mxu1 %v2069_v32  ;;  %v2119_v32 = vpack.c.bf16 %v1030_v29, %v1028_v28  ;;  %v1228_v28 = vld [vmem:[#allocation8 + $0x1f8] sm:$0xff] }
 0x192   : > { %2074 = vmatprep.subr.bf16.mxu1 %v2864_v3 }
 0x257   : > { %v1966_v35 = vpop.f32.mrb[4].mxu1 }
 0x258   : > { %v642_v36 = vpop.f32.mrb[5].mxu1 }
 0x259   : > { %1983 = vmatprep.mubr.msk.f32.mxu1 %vm483_vm1, %v642_v36  ;;  %v1037_v36 = vld [vmem:[#allocation8 + $0xe8] sm:$0xff] }
 0x25a   : > { %1984 = vmatmul.mubr.msk.f32.vlgmr.msra.gmra.mrb[2].mxu1 %vm483_vm1, %v1966_v35  ;;  %v1034_v35 = vld [vmem:[#allocation8 + $0xd0] sm:$0xff] }
 0x25b   : > { %2076 = vmatpush3.bf16.msra.mxu1 %v2864_v3  ;;  %1990 = vmatprep.mubr.msk.f32.mxu1 %vm393_vm0, %v744_v37  ;;  %v2101_v3 = vpack.c.bf16 %v1015_v1, %v1013_v0  ;;  %v1207_v0 = vld [vmem:[#allocation8 + $0x150] sm:$0xff] }
 0x25c   : > { %2078 = vmatprep.subr.bf16.mxu1 %v2077_v38  ;;  %v2143_v5 = vpack.c.bf16 %v1207_v0, %v1205_v63  ;;  %v1402_v63 = vld [vmem:[#allocation8 + $0x280] sm:$0xff]  ;;  %v1404_v0 = vld [vmem:[#allocation8 + $0x290] sm:$0xff] }
 0x25e   : > { %1991 = vmatmul.mubr.msk.f32.vlgmr.msra.gmra.mrb[6].mxu1 %vm393_vm0, %v745_v41 }
 0x25f   : > { %2080 = vmatpush3.bf16.msra.mxu1 %v2077_v38  ;;  %v2123_v38 = vpack.c.bf16 %v1034_v35, %v1032_v34  ;;  %v1389_v34 = vld [vmem:[#allocation8 + $0x218] sm:$0xff] }
 0x260   : > { %2082 = vmatprep.subr.bf16.mxu1 %v2081_v42 }
 0x263   : > { %2084 = vmatpush3.bf16.msra.mxu1 %v2081_v42 }
 0x264   : > { %2086 = vmatprep.subr.bf16.mxu1 %v2085_v45 }
 0x267   : > { %2088 = vmatpush3.bf16.msra.mxu1 %v2085_v45  ;;  %v2133_v45 = vpack.c.bf16 %v1200_v44, %v1198_v43  ;;  %v1390_v43 = vld [vmem:[#allocation8 + $0x220] sm:$0xff]  ;;  %v1392_v44 = vld [vmem:[#allocation8 + $0x230] sm:$0xff] }
 0x268   : > { %2090 = vmatprep.subr.bf16.mxu1 %v2089_v48 }
 0x26b   : > { %2092 = vmatpush3.bf16.msra.mxu1 %v2089_v48  ;;  %v1199_v48 = vld [vmem:[#allocation8 + $0x110] sm:$0xff] }
 0x331   : > { %v1992_v49 = vpop.f32.mrb[6].mxu1 }
 0x332   : > { %v818_v50 = vpop.f32.mrb[7].mxu1 }
 0x333   : > { %2009 = vmatprep.mubr.msk.f32.mxu1 %vm483_vm1, %v818_v50  ;;  %v1204_v50 = vld [vmem:[#allocation8 + $0x138] sm:$0xff] }
 0x334   : > { %2010 = vmatmul.mubr.msk.f32.vlgmr.msra.gmra.mrb[2].mxu1 %vm483_vm1, %v1992_v49  ;;  %v1202_v49 = vld [vmem:[#allocation8 + $0x128] sm:$0xff] }
 0x335   : > { %2023 = vmatprep.mubr.msk.f32.mxu1 %vm393_vm0, %v568_v21  ;;  %v2113_v21 = vpack.c.bf16 %v1027_v19, %v1025_v18  ;;  %v1217_v19 = vld [vmem:[#allocation8 + $0x1a0] sm:$0xff] }
 0x407   : > { %v2011_v52 = vpop.f32.mrb[2].mxu1 }
 0x408   : > { %v2237_v53 = vadd.f32 %v2011_v52, %v1820_v51  ;;  %v908_v54 = vpop.f32.mrb[3].mxu1 }
 0x409   : > { %v2238_v55 = vadd.f32 %v1820_v51, %v908_v54  ;;  %v2135_v51 = vpack.c.bf16 %v1199_v48, %v1197_v47  ;;  %v1201_v54 = vld [vmem:[#allocation8 + $0x120] sm:$0xff]  ;;  %v1397_v47 = vld [vmem:[#allocation8 + $0x258] sm:$0xff]  ;;  %v2175_v48 = vpack.c.bf16 %v1392_v44, %v1390_v43  ;;  %v1579_v43 = vld [vmem:[#allocation10 + $0x8] sm:$0xff] }
 0x40a   : > { %v920_v56 = vmax.f32 %v2237_v53, 0.0  ;;  %v2137_v53 = vpack.c.bf16 %v1204_v50, %v1202_v49  ;;  %v1394_v50 = vld [vmem:[#allocation8 + $0x240] sm:$0xff]  ;;  %v1596_v44 = vld [vmem:[#allocation10 + $0x90] sm:$0xff] }
 0x40b   : > { %v919_v59 = vmax.f32 %v2238_v55, 0.0  ;;  %v1203_v55 = vld [vmem:[#allocation8 + $0x130] sm:$0xff] }
 0x40d   : > { %v2093_v60 = vpack.c.bf16 %v920_v56, %v919_v59  ;;  %v1208_v59 = vld [vmem:[#allocation8 + $0x158] sm:$0xff] }
 0x40e   : > { %v2141_v62 = vpack.c.bf16 %v1208_v59, %v1206_v58  ;;  %v1400_v58 = vld [vmem:[#allocation8 + $0x270] sm:$0xff]  ;;  %v1403_v59 = vld [vmem:[#allocation8 + $0x288] sm:$0xff] }
 0x40f   : > { %2094 = vmatprep.subr.bf16.mxu0 %v2093_v60  ;;  %2130 = vmatprep.subr.bf16.mxu1 %v2093_v60 }
 0x410   : > { %2096 = vmatpush3.bf16.msra.mxu0 %v2093_v60  ;;  %2132 = vmatpush3.bf16.msra.mxu1 %v2093_v60 }
 0x411   : > { %2166 = vmatprep.subr.bf16.mxu1 %v2093_v60  ;;  %2098 = vmatprep.subr.bf16.mxu0 %v2097_v61  ;;  %v2139_v61 = vpack.c.bf16 %v1203_v55, %v1201_v54 }
 0x413   : > { %2017 = vmatmul.mubr.msk.f32.vlgmr.msra.gmra.mrb[0].mxu0 %vm393_vm0, %v2870_v9  ;;  %2024 = vmatmul.mubr.msk.f32.vlgmr.msra.gmra.mrb[8].mxu1 %vm393_vm0, %v2879_v25  ;;  %v2107_v9 = vpack.c.bf16 %v1018_v12, %v1016_v11  ;;  %v1031_v25 = vld [vmem:[#allocation8 + $0xb8] sm:$0xff] }
 0x414   : > { %2168 = vmatpush3.bf16.msra.mxu1 %v2093_v60  ;;  %2030 = vmatprep.mubr.msk.f32.mxu1 %vm393_vm0, %v744_v37  ;;  %v2117_v27 = vpack.c.bf16 %v1031_v25, %v1029_v24  ;;  %v1039_v37 = vld [vmem:[#allocation8 + $0xf8] sm:$0xff]  ;;  %v1221_v25 = vld [vmem:[#allocation8 + $0x1c0] sm:$0xff] }
 0x415   : > { %2100 = vmatpush1.bf16.msra.mxu0 %v2099_v2  ;;  %v2125_v39 = vpack.c.bf16 %v1039_v37, %v1037_v36  ;;  %1104 = vmatprep.mubr.f32.mxu0 %v2574_v46  ;;  %v1210_v2 = vld [vmem:[#allocation8 + $0x168] sm:$0xff]  ;;  %v1216_v11 = vld [vmem:[#allocation8 + $0x198] sm:$0xff]  ;;  %v1386_v37 = vld [vmem:[#allocation8 + $0x200] sm:$0xff] }
 0x416   : > { %2102 = vmatprep.subr.bf16.mxu0 %v2101_v3  ;;  %v1212_v3 = vld [vmem:[#allocation8 + $0x178] sm:$0xff] }
 0x417   : > { %2031 = vmatmul.mubr.msk.f32.vlgmr.msra.gmra.mrb[10].mxu1 %vm393_vm0, %v745_v41  ;;  %v1038_v41 = vld [vmem:[#allocation8 + $0xf0] sm:$0xff]  ;;  %v2145_v6 = vpack.c.bf16 %v1212_v3, %v1210_v2  ;;  %v1407_v2 = vld [vmem:[#allocation8 + $0x2a8] sm:$0xff]  ;;  %v1409_v3 = vld [vmem:[#allocation8 + $0x2b8] sm:$0xff] }
 0x418   : > { %v2127_v42 = vpack.c.bf16 %v1038_v41, %v1036_v40  ;;  %1571 = vmatprep.mubr.f32.mxu1 %v2574_v46  ;;  %v1393_v40 = vld [vmem:[#allocation8 + $0x238] sm:$0xff] }
 0x419   : > { %2104 = vmatpush1.bf16.msra.mxu0 %v2103_v8  ;;  %v1211_v8 = vld [vmem:[#allocation8 + $0x170] sm:$0xff] }
 0x41a   : > { %2106 = vmatprep.subr.bf16.mxu0 %v2105_v10  ;;  %v1214_v10 = vld [vmem:[#allocation8 + $0x188] sm:$0xff]  ;;  %v2147_v12 = vpack.c.bf16 %v1211_v8, %v1209_v7  ;;  %v1408_v7 = vld [vmem:[#allocation8 + $0x2b0] sm:$0xff] }
 0x41b   : > { %v2149_v13 = vpack.c.bf16 %v1216_v11, %v1214_v10  ;;  %v1411_v8 = vld [vmem:[#allocation8 + $0x2c8] sm:$0xff]  ;;  %v1413_v10 = vld [vmem:[#allocation8 + $0x2d8] sm:$0xff] }
 0x41d   : > { %2108 = vmatpush1.bf16.msra.mxu0 %v2107_v9  ;;  %v1215_v9 = vld [vmem:[#allocation8 + $0x190] sm:$0xff] }
 0x41e   : > { %2110 = vmatprep.subr.bf16.mxu0 %v2109_v15  ;;  %v1218_v15 = vld [vmem:[#allocation8 + $0x1a8] sm:$0xff]  ;;  %v2151_v17 = vpack.c.bf16 %v1215_v9, %v1213_v14  ;;  %v1412_v14 = vld [vmem:[#allocation8 + $0x2d0] sm:$0xff] }
 0x41f   : > { %v2153_v18 = vpack.c.bf16 %v1220_v16, %v1218_v15  ;;  %v1415_v9 = vld [vmem:[#allocation8 + $0x2e8] sm:$0xff]  ;;  %v1417_v15 = vld [vmem:[#allocation8 + $0x2f8] sm:$0xff] }
 0x421   : > { %2112 = vmatpush1.bf16.msra.mxu0 %v2111_v20  ;;  %v1219_v20 = vld [vmem:[#allocation8 + $0x1b0] sm:$0xff] }
 0x422   : > { %2114 = vmatprep.subr.bf16.mxu0 %v2113_v21  ;;  %v1222_v21 = vld [vmem:[#allocation8 + $0x1c8] sm:$0xff]  ;;  %v2155_v23 = vpack.c.bf16 %v1219_v20, %v1217_v19  ;;  %v1416_v19 = vld [vmem:[#allocation8 + $0x2f0] sm:$0xff] }
 0x423   : > { %v2157_v24 = vpack.c.bf16 %v1224_v22, %v1222_v21  ;;  %v923_v21 = vlaneseq }
 0x425   : > { %2116 = vmatpush1.bf16.msra.mxu0 %v2115_v26  ;;  %v1223_v26 = vld [vmem:[#allocation8 + $0x1d0] sm:$0xff]  ;;  %v924_v22 = vshrl.u32 %v923_v21, 7  ;;  %v1609_v21 = vld [vmem:[#allocation10 + $0xf8] sm:$0xff] }
 0x426   : > { %2118 = vmatprep.subr.bf16.mxu0 %v2117_v27  ;;  %v1226_v27 = vld [vmem:[#allocation8 + $0x1e8] sm:$0xff]  ;;  %v2159_v29 = vpack.c.bf16 %v1223_v26, %v1221_v25 }
 0x427   : > { %v2161_v30 = vpack.c.bf16 %v1228_v28, %v1226_v27  ;;  %v929_v25 = vsub.s32 1, %v924_v22 }
 0x429   : > { %2120 = vmatpush1.bf16.msra.mxu0 %v2119_v32  ;;  %v1227_v32 = vld [vmem:[#allocation8 + $0x1f0] sm:$0xff] }
 0x42a   : > { %2122 = vmatprep.subr.bf16.mxu0 %v2121_v33  ;;  %v1387_v33 = vld [vmem:[#allocation8 + $0x208] sm:$0xff]  ;;  %v2163_v35 = vpack.c.bf16 %v1227_v32, %v1225_v31 }
 0x42b   : > { %v2169_v36 = vpack.c.bf16 %v1389_v34, %v1387_v33 }
 0x42d   : > { %2124 = vmatpush1.bf16.msra.mxu0 %v2123_v38  ;;  %v1388_v38 = vld [vmem:[#allocation8 + $0x210] sm:$0xff] }
 0x42e   : > { %2126 = vmatprep.subr.bf16.mxu0 %v2125_v39  ;;  %v1391_v39 = vld [vmem:[#allocation8 + $0x228] sm:$0xff]  ;;  %v2171_v41 = vpack.c.bf16 %v1388_v38, %v1386_v37 }
 0x431   : > { %2128 = vmatpush1.bf16.msra.mxu0 %v2127_v42  ;;  %v2173_v42 = vpack.c.bf16 %v1393_v40, %v1391_v39 }
 0x432   : > { %2134 = vmatprep.subr.bf16.mxu0 %v2133_v45  ;;  %v1395_v45 = vld [vmem:[#allocation8 + $0x248] sm:$0xff] }
 0x433   : > { %v2177_v49 = vpack.c.bf16 %v1397_v47, %v1395_v45  ;;  %v1597_v45 = vld [vmem:[#allocation10 + $0x98] sm:$0xff]  ;;  %v1503_v47 = vld [vmem:[%s2982_s6] sm:$0xff] }
 0x4e6   : > { %v2018_v52 = vpop.f32.mrb[0].mxu0  ;;  %v2903_v56 = vpop.f32.mrb[8].mxu1 }
 0x4e7   : > { %v999_v57 = vpop.f32.mrb[1].mxu0  ;;  %v2905_v60 = vpop.f32.mrb[9].mxu1 }
 0x4e8   : > { %1105 = vmatmul.mubr.f32.vlgmr.msra.gmra.mrb[2].mxu0 %v999_v57  ;;  %v1398_v57 = vld [vmem:[#allocation8 + $0x260] sm:$0xff] }
 0x4e9   : > { %2136 = vmatpush1.bf16.msra.mxu0 %v2135_v51  ;;  %1110 = vmatprep.mubr.f32.mxu0 %v2574_v46  ;;  %v1396_v51 = vld [vmem:[#allocation8 + $0x250] sm:$0xff] }
 0x4ea   : > { %2138 = vmatprep.subr.bf16.mxu0 %v2137_v53  ;;  %v2908_v1 = vpop.f32.mrb[10].mxu1  ;;  %v1401_v53 = vld [vmem:[#allocation8 + $0x278] sm:$0xff]  ;;  %v2179_v54 = vpack.c.bf16 %v1396_v51, %v1394_v50  ;;  %v1580_v50 = vld [vmem:[#allocation10 + $0x10] sm:$0xff] }
 0x4eb   : > { %v2910_v4 = vpop.f32.mrb[11].mxu1  ;;  %v1581_v51 = vld [vmem:[#allocation10 + $0x18] sm:$0xff] }
 0x4ec   : > { %1111 = vmatmul.mubr.f32.gmra.mrb[4].mxu0 %v2018_v52  ;;  %v1399_v52 = vld [vmem:[#allocation8 + $0x268] sm:$0xff] }
 0x4ed   : > { %2140 = vmatpush1.bf16.msra.mxu0 %v2139_v61  ;;  %1293 = vmatprep.mubr.f32.mxu0 %v2574_v46  ;;  %v2181_v55 = vpack.c.bf16 %v1401_v53, %v1399_v52  ;;  %v2183_v61 = vpack.c.bf16 %v1400_v58, %v1398_v57  ;;  %v1598_v52 = vld [vmem:[#allocation10 + $0xa0] sm:$0xff]  ;;  %v1599_v53 = vld [vmem:[#allocation10 + $0xa8] sm:$0xff] }
 0x4ee   : > { %2142 = vmatprep.subr.bf16.mxu0 %v2141_v62  ;;  %v1582_v57 = vld [vmem:[#allocation10 + $0x20] sm:$0xff]  ;;  %v1583_v58 = vld [vmem:[#allocation10 + $0x28] sm:$0xff] }
 0x4f1   : > { %2144 = vmatpush1.bf16.msra.mxu0 %v2143_v5  ;;  %v2189_v5 = vpack.c.bf16 %v1409_v3, %v1407_v2  ;;  %v1602_v2 = vld [vmem:[#allocation10 + $0xc0] sm:$0xff]  ;;  %v1603_v3 = vld [vmem:[#allocation10 + $0xc8] sm:$0xff] }
 0x4f2   : > { %2146 = vmatprep.subr.bf16.mxu0 %v2145_v6  ;;  %v1406_v6 = vld [vmem:[#allocation8 + $0x2a0] sm:$0xff] }
 0x4f3   : > { %v2191_v11 = vpack.c.bf16 %v1408_v7, %v1406_v6  ;;  %v1586_v6 = vld [vmem:[#allocation10 + $0x40] sm:$0xff]  ;;  %v1587_v7 = vld [vmem:[#allocation10 + $0x48] sm:$0xff] }
 0x4f5   : > { %2148 = vmatpush1.bf16.msra.mxu0 %v2147_v12  ;;  %v2193_v12 = vpack.c.bf16 %v1413_v10, %v1411_v8  ;;  %v1604_v8 = vld [vmem:[#allocation10 + $0xd0] sm:$0xff]  ;;  %v1605_v10 = vld [vmem:[#allocation10 + $0xd8] sm:$0xff] }
 0x4f6   : > { %2150 = vmatprep.subr.bf16.mxu0 %v2149_v13  ;;  %v1410_v13 = vld [vmem:[#allocation8 + $0x2c0] sm:$0xff] }
 0x4f7   : > { %v2195_v16 = vpack.c.bf16 %v1412_v14, %v1410_v13  ;;  %v1588_v13 = vld [vmem:[#allocation10 + $0x50] sm:$0xff]  ;;  %v1589_v14 = vld [vmem:[#allocation10 + $0x58] sm:$0xff] }
 0x4f9   : > { %2152 = vmatpush1.bf16.msra.mxu0 %v2151_v17  ;;  %v2197_v17 = vpack.c.bf16 %v1417_v15, %v1415_v9  ;;  %v1606_v9 = vld [vmem:[#allocation10 + $0xe0] sm:$0xff]  ;;  %v1607_v15 = vld [vmem:[#allocation10 + $0xe8] sm:$0xff] }
 0x4fa   : > { %2154 = vmatprep.subr.bf16.mxu0 %v2153_v18  ;;  %v1414_v18 = vld [vmem:[#allocation8 + $0x2e0] sm:$0xff] }
 0x4fb   : > { %v2199_v20 = vpack.c.bf16 %v1416_v19, %v1414_v18  ;;  %v1590_v18 = vld [vmem:[#allocation10 + $0x60] sm:$0xff]  ;;  %v1591_v19 = vld [vmem:[#allocation10 + $0x68] sm:$0xff] }
 0x4fd   : > { %2156 = vmatpush1.bf16.msra.mxu0 %v2155_v23  ;;  %v925_v23 = vsub.s32 0, %v924_v22  ;;  %v2231_v22 = vpack.c.bf16 %v1591_v19, %v1590_v18 }
 0x4fe   : > { %2158 = vmatprep.subr.bf16.mxu0 %v2157_v24  ;;  %v921_v24 = vld [vmem:[%s2981_s5] sm:$0x3] }
 0x4ff   : > { %v926_v26 = vrot.slane %v921_v24, %v925_v23  ;;  %v930_v28 = vrot.slane %v921_v24, %v929_v25  ;;  %v1592_v24 = vld [vmem:[#allocation10 + $0x70] sm:$0xff]  ;;  %v1593_v25 = vld [vmem:[#allocation10 + $0x78] sm:$0xff] }
 0x501   : > { %2160 = vmatpush1.bf16.msra.mxu0 %v2159_v29 }
 0x502   : > { %2162 = vmatprep.subr.bf16.mxu0 %v2161_v30 }
 0x505   : > { %2164 = vmatpush1.bf16.msra.mxu0 %v2163_v35  ;;  %v1594_v35 = vld [vmem:[#allocation10 + $0x80] sm:$0xff] }
 0x506   : > { %2170 = vmatprep.subr.bf16.mxu0 %v2169_v36  ;;  %v1595_v36 = vld [vmem:[#allocation10 + $0x88] sm:$0xff] }
 0x508   : > { %1294 = vmatmul.mubr.f32.vlgmr.msra.gmra.mrb[2].mxu0 %v2905_v60  ;;  %v1405_v60 = vld [vmem:[#allocation8 + $0x298] sm:$0xff] }
 0x509   : > { %2172 = vmatpush1.bf16.msra.mxu0 %v2171_v41  ;;  %1299 = vmatprep.mubr.f32.mxu0 %v2574_v46  ;;  %v2185_v62 = vpack.c.bf16 %v1405_v60, %v1403_v59  ;;  %v2205_v41 = vpack.c.bf16 %v1595_v36, %v1594_v35  ;;  %v1600_v59 = vld [vmem:[#allocation10 + $0xb0] sm:$0xff]  ;;  %v1601_v60 = vld [vmem:[#allocation10 + $0xb8] sm:$0xff] }
 0x50a   : > { %2174 = vmatprep.subr.bf16.mxu0 %v2173_v42  ;;  %v1578_v42 = vld [vmem:[#allocation10] sm:$0xff] }
 0x50c   : > { %1300 = vmatmul.mubr.f32.gmra.mrb[4].mxu0 %v2903_v56  ;;  %v2187_v56 = vpack.c.bf16 %v1404_v0, %v1402_v63  ;;  %v1584_v63 = vld [vmem:[#allocation10 + $0x30] sm:$0xff]  ;;  %v1585_v0 = vld [vmem:[#allocation10 + $0x38] sm:$0xff] }
 0x50d   : > { %2176 = vmatpush1.bf16.msra.mxu0 %v2175_v48  ;;  %1482 = vmatprep.mubr.f32.mxu0 %v2574_v46  ;;  %v2207_v48 = vpack.c.bf16 %v1579_v43, %v1578_v42 }
 0x50e   : > { %2178 = vmatprep.subr.bf16.mxu0 %v2177_v49  ;;  %v2209_v49 = vpack.c.bf16 %v1597_v45, %v1596_v44 }
 0x511   : > { %2180 = vmatpush1.bf16.msra.mxu0 %v2179_v54  ;;  %v2211_v54 = vpack.c.bf16 %v1581_v51, %v1580_v50 }
 0x512   : > { %2182 = vmatprep.subr.bf16.mxu0 %v2181_v55  ;;  %v2213_v55 = vpack.c.bf16 %v1599_v53, %v1598_v52 }
 0x515   : > { %2184 = vmatpush1.bf16.msra.mxu0 %v2183_v61  ;;  %v2215_v61 = vpack.c.bf16 %v1583_v58, %v1582_v57 }
 0x516   : > { %2186 = vmatprep.subr.bf16.mxu0 %v2185_v62  ;;  %v2217_v62 = vpack.c.bf16 %v1601_v60, %v1600_v59 }
 0x519   : > { %2188 = vmatpush1.bf16.msra.mxu0 %v2187_v56  ;;  %v2219_v56 = vpack.c.bf16 %v1585_v0, %v1584_v63 }
 0x51a   : > { %2190 = vmatprep.subr.bf16.mxu0 %v2189_v5  ;;  %v2221_v5 = vpack.c.bf16 %v1603_v3, %v1602_v2 }
 0x51d   : > { %2192 = vmatpush1.bf16.msra.mxu0 %v2191_v11  ;;  %v2223_v11 = vpack.c.bf16 %v1587_v7, %v1586_v6 }
 0x51e   : > { %2194 = vmatprep.subr.bf16.mxu0 %v2193_v12  ;;  %v2225_v12 = vpack.c.bf16 %v1605_v10, %v1604_v8 }
 0x521   : > { %2196 = vmatpush1.bf16.msra.mxu0 %v2195_v16  ;;  %v2227_v16 = vpack.c.bf16 %v1589_v14, %v1588_v13 }
 0x522   : > { %2198 = vmatprep.subr.bf16.mxu0 %v2197_v17  ;;  %v2229_v17 = vpack.c.bf16 %v1607_v15, %v1606_v9 }
 0x525   : > { %2200 = vmatpush1.bf16.msra.mxu0 %v2199_v20  ;;  %v1608_v20 = vld [vmem:[#allocation10 + $0xf0] sm:$0xff] }
 0x526   : > { %v2233_v23 = vpack.c.bf16 %v1609_v21, %v1608_v20 }
 0x528   : > { %1483 = vmatmul.mubr.f32.vlgmr.msra.gmra.mrb[2].mxu0 %v2910_v4 }
 0x529   : > { %1488 = vmatprep.mubr.f32.mxu0 %v2574_v46 }
 0x52c   : > { %1489 = vmatmul.mubr.f32.gmra.mrb[4].mxu0 %v2908_v1 }
 0x5fb   : > { %v1484_v27 = vpop.f32.mrb[2].mxu0 }
 0x5fc   : > { %v1486_v29 = vpop.f32.mrb[3].mxu0  ;;  %v2239_v30 = vadd.f32 %v1484_v27, %v926_v26 }
 0x5fd   : > { %v2240_v31 = vadd.f32 %v1486_v29, %v930_v28 }
 0x5fe   : > { %v1499_v34 = vmax.f32 %v2239_v30, 0.0 }
 0x5ff   : > { %v1490_v32 = vpop.f32.mrb[4].mxu0  ;;  %v1500_v37 = vmax.f32 %v2240_v31, 0.0 }
 0x600   : > { %v2241_v4 = vadd.f32 %v1490_v32, %v926_v26  ;;  %v1492_v33 = vpop.f32.mrb[5].mxu0  ;;  %v2235_v26 = vpack.c.bf16 %v1593_v25, %v1592_v24 }
 0x601   : > { %v2242_v46 = vadd.f32 %v1492_v33, %v930_v28 }
 0x602   : > { %v1501_v1 = vmax.f32 %v2241_v4, 0.0 }
 0x603   : > { %v1502_v38 = vmax.f32 %v2242_v46, 0.0 }
 0x604   : > { %v2203_v39 = vpack.c.bf16 %v1501_v1, %v1499_v34 }
 0x605   : > { %v2201_v40 = vpack.c.bf16 %v1502_v38, %v1500_v37 }
 0x607   : > { %2202 = vmatprep.subr.bf16.mxu1 %v2201_v40 }
 0x608   : > { %2204 = vmatpush1.bf16.msra.mxu1 %v2203_v39 }
 0x609   : > { %2206 = vmatprep.subr.bf16.mxu1 %v2205_v41 }
 0x60b   : > { %1839 = vmatmul.mubr.msk.f32.vlgmr.msra.gmra.mrb[12].mxu1 %vm393_vm0, %v1503_v47 }
 0x60c   : > { %2208 = vmatpush3.bf16.msra.mxu1 %v2207_v48 }
 0x60d   : > { %2210 = vmatprep.subr.bf16.mxu1 %v2209_v49 }
 0x610   : > { %2212 = vmatpush3.bf16.msra.mxu1 %v2211_v54 }
 0x611   : > { %2214 = vmatprep.subr.bf16.mxu1 %v2213_v55 }
 0x614   : > { %2216 = vmatpush3.bf16.msra.mxu1 %v2215_v61 }
 0x615   : > { %2218 = vmatprep.subr.bf16.mxu1 %v2217_v62 }
 0x618   : > { %2220 = vmatpush3.bf16.msra.mxu1 %v2219_v56 }
 0x619   : > { %2222 = vmatprep.subr.bf16.mxu1 %v2221_v5 }
 0x61c   : > { %2224 = vmatpush3.bf16.msra.mxu1 %v2223_v11 }
 0x61d   : > { %2226 = vmatprep.subr.bf16.mxu1 %v2225_v12 }
 0x620   : > { %2228 = vmatpush3.bf16.msra.mxu1 %v2227_v16 }
 0x621   : > { %2230 = vmatprep.subr.bf16.mxu1 %v2229_v17 }
 0x624   : > { %2232 = vmatpush3.bf16.msra.mxu1 %v2231_v22 }
 0x625   : > { %2234 = vmatprep.subr.bf16.mxu1 %v2233_v23 }
 0x628   : > { %2236 = vmatpush3.bf16.msra.mxu1 %v2235_v26 }
 0x6de   : > { %v1573_v27 = vpop.f32.mrb[12].mxu1 }
 0x6df   : > { %v1575_v28 = vpop.f32.mrb[13].mxu1 }
 0x6e0   : > { %1674 = vmatprep.mubr.f32.mxu1 %v1575_v28 }
 0x6e1   : > { %1675 = vmatmul.mubr.f32.vlgmr.msra.gmra.mrb[14].mxu1 %v1573_v27 }
 0x7b4   : > { %v1931_v29 = vpop.f32.mrb[14].mxu1 }
 0x7b5   : > { %v1932_v30 = vpop.f32.mrb[15].mxu1 }
 0x7b6   : > { %v1933_v31 = vadd.f32 %v1932_v30, %v1931_v29 }
 0x7b8   : > { %1680 = vst [vmem:[%s381_s10] sm:$0xff] %v1933_v31 }
 0x7b9   : > { %2502 = shalt.err (!%p2499_p13)
}
 0x7ba   : > { %s2503_s14 = scalar_lea.hbm %s2932_s23, 128  ;;  %s2507_s19 = scalar_lea.hbm %s2984_s8, 256 }
 0x7bb   : > { %p2504_p9 = scmp.ne.s32.totalorder %s2932_s23, %s2503_s14  ;;  %p2508_p11 = scmp.lt.u32.totalorder %s2932_s23, %s2984_s8 }
 0x7bc   : > { %p2509_p4 = scmp.lt.u32.totalorder %s2507_s19, %s2503_s14  ;;  %p2511_p10 = scmp.lt.u32.totalorder %s2503_s14, %s2932_s23 }
 0x7bd   : > { %p2505_p0 = pnand %p2504_p9, %p2796_p3 }
 0x7be   : > { %p2510_p8 = por %p2509_p4, %p2508_p11 }
 0x7bf   : > { %p2506_p6 = pneg %p2505_p0 }
 0x7c0   : > { %p2512_p5 = por %p2511_p10, %p2510_p8 }
 0x7c2   : > { %p2513_p7 = pnand %p2512_p5, %p2506_p6 }
 0x7c4   : > { %2516 = shalt.err (!%p2513_p7)
}
 0x7c5   : > { %2273 = dma.vmem_to_hbm [thread:$0]  (%p2796_p3), %s2934_s26, 128, %s2932_s23, %s1682_s25  }
 0x7c6 PF: > { %s3012_s10 = sld [smem:[#allocation16_spill]]  ;;  %s1707_s20 = sand.u32 1, %s2551_s27  }
 0x7c7   : > { %p3014_p1 = scmp.ge.s32.totalorder %s2563_s30, 2  ;;  %s1708_s15 = scalar_lea.sflag [#allocation4], %s1707_s20 }
 0x7cc   : > { %p3013_p12 = scmp.ne.s32.totalorder %s3012_s10, 0 }
 0x7ce   : > { %p2293_p2 = pnand %p3014_p1, %p3013_p12 }
 0x7d0   : > { %2546 = dma.done.wait (!%p2293_p2), %s1708_s15, 128  }
 0x7d1   : > { %2548 = vsyncadd (!%p2293_p2), %s1708_s15, 4294967168  ;;  %p23_p13 = scmp.ge.s32.totalorder %s2783_s16, 4   ;;  %s3015_s27 = smov %s2555_s28 }
 0x7d2   : > { %s3016_s28 = smov %s2559_s29  ;;  %s3017_s29 = smov %s2792_s21 }
 0x7d3   : > { %s3018_s30 = smov %s2783_s16  ;;  %25 = sbr.rel (!%p23_p13) target bundleno = 9 (0x9), region = 119 }
 0x7da   :  { %1713 = vsyncpa [#allocation3], 1 }
 0x7db   :  { %1715 = vsyncpa [#allocation3 + $0x1], 1 }
 0x7dc   :  { %1716 = vsyncpa [#allocation6], 1 }
 0x7dd   :  { %1717 = vsyncpa [#allocation9], 1 }
 0x7de   :  { %1718 = vsyncpa [#allocation4], 1 }
 0x7df   :  { %1720 = vsyncpa [#allocation4 + $0x1], 1 }

</bundles_post_ra>
